<compile_context>
chip_gen: v7x
topology: tpu7x:2x2x1
jax: 0.10.0
libtpu: 0.0.40
codegen_flags: <defaults>
</compile_context>

<pallas_src>
import functools
import math

import jax
import jax.numpy as jnp
from jax.experimental import pallas as pl
from jax.experimental.pallas import tpu as pltpu

# Small, deterministic config (config.dim=32, config.n_heads=4).
B, S, D = 2, 8, 32
H = 4
DH = D // H


def _gat_self_attn_kernel(x_ref, wqkv_ref, bqkv_ref, o_ref, *, dim, n_heads):
    """Fused multi-head self-attention + ReLU for ONE batch element.

    x_ref:    (1, S, D)   activations for this grid step's batch element
    wqkv_ref: (D, 3*D)    [Wq*scale | Wk | Wv] fused (VMEM-resident across steps)
    bqkv_ref: (1, 3*D)    [bq*scale | bk | bv] fused
    o_ref:    (1, S, D)   output (relu(context))
    """
    head_dim = dim // n_heads
    x2d = x_ref[0]                                            # (S, D)

    # One fused QKV projection: (S, D) @ (D, 3D) -> (S, 3D); bias broadcast over
    # sublanes.  The 1/sqrt(DH) score scale is already baked into the Q columns.
    qkv = jnp.dot(x2d, wqkv_ref[...],
                  preferred_element_type=jnp.float32) + bqkv_ref[0]

    # Per-head loop, statically unrolled (n_heads=4).  Each head is two tiny MXU
    # issues ((S,DH)@(DH,S) and (S,S)@(S,DH)).  These stay on the MXU; a VPU
    # broadcast-mul + reduce alternative would only pay off if a bundle dump
    # showed vmatmul fill/drain + MRF pops dominating (not measurable here).
    for head in range(n_heads):
        q_sl = slice(head * head_dim, (head + 1) * head_dim)
        k_sl = slice(dim + head * head_dim, dim + (head + 1) * head_dim)
        v_sl = slice(2 * dim + head * head_dim, 2 * dim + (head + 1) * head_dim)
        qh = qkv[:, q_sl]                                     # (S, DH)
        kh = qkv[:, k_sl]
        vh = qkv[:, v_sl]

        # scores = qh @ kh.T  -> (S, S)
        scores = jax.lax.dot_general(
            qh, kh, (((1,), (1,)), ((), ())),
            preferred_element_type=jnp.float32)
        scores = scores - jnp.max(scores, axis=-1, keepdims=True)
        p = jnp.exp(scores)
        p = p / jnp.sum(p, axis=-1, keepdims=True)            # exact softmax divide

        ctx = jnp.dot(p, vh, preferred_element_type=jnp.float32)   # (S, DH)

        # ReLU fused; write straight into this head's lane slice of the output
        # (no lane-axis concat / intermediate buffer).
        o_ref[0, :, q_sl] = jnp.maximum(ctx, 0.0).astype(o_ref.dtype)


def graph_attention_layer(x, adj, wq, bq, wk, bk, wv, bv, *, n_heads=H):
    """Mirrors GraphAttentionLayer.forward((x, adj)) with method='self',
    directional=False, eval mode."""
    batch, seq, dim = x.shape
    head_dim = dim // n_heads
    scale = 1.0 / math.sqrt(head_dim)

    # One-time weight prep (constants): fuse the three projections and fold the
    # 1/sqrt(DH) score scale into the Q columns so the kernel body is pure
    # matmul + softmax work.
    wqkv = jnp.concatenate([wq * scale, wk, wv], axis=1)                # (D, 3D)
    bqkv = jnp.concatenate([bq * scale, bk, bv]).reshape(1, 3 * dim)    # (1, 3D)

    kernel = functools.partial(_gat_self_attn_kernel, dim=dim, n_heads=n_heads)

    h_out = pl.pallas_call(
        kernel,
        out_shape=jax.ShapeDtypeStruct((batch, seq, dim), jnp.float32),
        grid=(batch,),                                # one independent problem / step
        in_specs=[
            pl.BlockSpec((1, seq, dim), lambda i: (i, 0, 0)),     # x[i]
            pl.BlockSpec((dim, 3 * dim), lambda i: (0, 0)),       # Wqkv (resident)
            pl.BlockSpec((1, 3 * dim), lambda i: (0, 0)),         # bqkv (resident)
        ],
        out_specs=pl.BlockSpec((1, seq, dim), lambda i: (i, 0, 0)),
        compiler_params=pltpu.CompilerParams(
            # Batch elements are independent -> shard across v7x's two TCs.
            dimension_semantics=("parallel",)),
    )(x, wqkv, bqkv)

    # adj is passed through untouched (directional=False skips the mask branch
    # inside SelfAttention.forward).
    return h_out, adj


def _reference(x, wq, bq, wk, bk, wv, bv):
    """Pure-JAX reference of the same forward pass (for correctness check)."""
    b, s, d = x.shape
    q = x @ wq + bq
    k = x @ wk + bk
    v = x @ wv + bv
    split = lambda t: t.reshape(b, s, H, DH).transpose(0, 2, 1, 3)   # (B,H,S,DH)
    qh, kh, vh = split(q), split(k), split(v)
    scores = jnp.einsum('bhqd,bhkd->bhqk', qh, kh) / math.sqrt(DH)
    probs = jax.nn.softmax(scores, axis=-1)
    ctx = jnp.einsum('bhqk,bhkd->bhqd', probs, vh)
    ctx = ctx.transpose(0, 2, 1, 3).reshape(b, s, d)
    return jnp.maximum(ctx, 0.0)


if __name__ == "__main__":
    key = jax.random.PRNGKey(0)
    kx, kq, kk, kv, kbq, kbk, kbv, kadj = jax.random.split(key, 8)

    x = jax.random.normal(kx, (B, S, D), dtype=jnp.float32)
    # adj passed through (directional=False) and returned as-is.
    adj = (jax.random.uniform(kadj, (B, S, S)) > 0.5).astype(jnp.float32)

    # nn.Linear-style init (weights stored as [in, out] for x @ W; PyTorch stores
    # [out, in], so real checkpoints need a transpose when ported).
    bound = 1.0 / math.sqrt(D)
    wq = jax.random.uniform(kq, (D, D), minval=-bound, maxval=bound, dtype=jnp.float32)
    wk = jax.random.uniform(kk, (D, D), minval=-bound, maxval=bound, dtype=jnp.float32)
    wv = jax.random.uniform(kv, (D, D), minval=-bound, maxval=bound, dtype=jnp.float32)
    bq = jax.random.uniform(kbq, (D,), minval=-bound, maxval=bound, dtype=jnp.float32)
    bk = jax.random.uniform(kbk, (D,), minval=-bound, maxval=bound, dtype=jnp.float32)
    bv = jax.random.uniform(kbv, (D,), minval=-bound, maxval=bound, dtype=jnp.float32)

    h, adj_out = graph_attention_layer(x, adj, wq, bq, wk, bk, wv, bv)
    h = jax.block_until_ready(h)

    ref = _reference(x, wq, bq, wk, bk, wv, bv)
    # Softmax divide is now exact; the remaining headroom covers only the default
    # (MXU bf16-pass) matmul precision of both the kernel and the XLA reference.
    assert jnp.allclose(h, ref, atol=1e-2, rtol=1e-2), "mismatch vs reference"
    assert jnp.array_equal(adj_out, adj)

    print("KERNEL_OK")
</pallas_src>

<mosaic_0001>
module attributes {stable_mosaic.version = 11 : i64} {
  func.func @_gat_self_attn_kernel(%arg0: i32, %arg1: memref<1x8x32xf32, #tpu.memory_space<vmem>>, %arg2: memref<32x96xf32, #tpu.memory_space<vmem>>, %arg3: memref<1x96xf32, #tpu.memory_space<vmem>>, %arg4: memref<1x8x32xf32, #tpu.memory_space<vmem>>) attributes {dimension_semantics = [#tpu.dimension_semantics<parallel>], iteration_bounds = array<i64: 2>, scalar_prefetch = 0 : i64, scratch_operands = 0 : i64, tpu.core_type = #tpu.core_type<tc>, window_params = [{transform_indices = @transform_0, window_bounds = array<i64: 1, 8, 32>}, {pipeline_mode = #tpu.pipeline_mode<synchronous>, transform_indices = @transform_1, window_bounds = array<i64: 32, 96>}, {pipeline_mode = #tpu.pipeline_mode<synchronous>, transform_indices = @transform_2, window_bounds = array<i64: 1, 96>}, {transform_indices = @transform_3, window_bounds = array<i64: 1, 8, 32>}]} {
    %c0 = arith.constant 0 : index
    %c0_0 = arith.constant 0 : index
    %c0_1 = arith.constant 0 : index
    %0 = vector.load %arg1[%c0, %c0_0, %c0_1] : memref<1x8x32xf32, #tpu.memory_space<vmem>>, vector<1x8x32xf32>
    %1 = vector.shape_cast %0 : vector<1x8x32xf32> to vector<8x32xf32>
    %c0_2 = arith.constant 0 : index
    %c0_3 = arith.constant 0 : index
    %2 = vector.load %arg2[%c0_2, %c0_3] : memref<32x96xf32, #tpu.memory_space<vmem>>, vector<32x96xf32>
    %cst = arith.constant dense<0.000000e+00> : vector<8x96xf32>
    %3 = tpu.matmul %1, %2, %cst {dimension_numbers = #tpu.dot_dimension_numbers<[1], [0], [0], [1], [0, 0, 1, 1], [], []>} : vector<8x32xf32>, vector<32x96xf32>, vector<8x96xf32> -> vector<8x96xf32>
    %c0_4 = arith.constant 0 : index
    %c0_5 = arith.constant 0 : index
    %4 = vector.load %arg3[%c0_4, %c0_5] : memref<1x96xf32, #tpu.memory_space<vmem>>, vector<1x96xf32>
    %5 = vector.shape_cast %4 : vector<1x96xf32> to vector<96xf32>
    %6 = vector.shape_cast %5 : vector<96xf32> to vector<1x96xf32>
    %7 = vector.broadcast %6 : vector<1x96xf32> to vector<8x96xf32>
    %8 = arith.addf %3, %7 : vector<8x96xf32>
    %9 = vector.extract_strided_slice %8 {offsets = [0, 0], sizes = [8, 8], strides = [1, 1]} : vector<8x96xf32> to vector<8x8xf32>
    %10 = vector.extract_strided_slice %8 {offsets = [0, 32], sizes = [8, 8], strides = [1, 1]} : vector<8x96xf32> to vector<8x8xf32>
    %11 = vector.extract_strided_slice %8 {offsets = [0, 64], sizes = [8, 8], strides = [1, 1]} : vector<8x96xf32> to vector<8x8xf32>
    %cst_6 = arith.constant dense<0.000000e+00> : vector<8x8xf32>
    %12 = tpu.matmul %9, %10, %cst_6 {dimension_numbers = #tpu.dot_dimension_numbers<[1], [1], [0], [0], [0, 0, 1, 0], [], []>} : vector<8x8xf32>, vector<8x8xf32>, vector<8x8xf32> -> vector<8x8xf32>
    %cst_7 = arith.constant dense<0xFF800000> : vector<8xf32>
    %13 = vector.multi_reduction <maximumf>, %12, %cst_7 [1] : vector<8x8xf32> to vector<8xf32>
    %14 = vector.shape_cast %13 : vector<8xf32> to vector<8x1xf32>
    %15 = vector.broadcast %14 : vector<8x1xf32> to vector<8x8xf32>
    %16 = arith.subf %12, %15 : vector<8x8xf32>
    %17 = math.exp %16 : vector<8x8xf32>
    %cst_8 = arith.constant dense<0.000000e+00> : vector<8xf32>
    %18 = vector.multi_reduction <add>, %17, %cst_8 [1] : vector<8x8xf32> to vector<8xf32>
    %19 = vector.shape_cast %18 : vector<8xf32> to vector<8x1xf32>
    %20 = vector.broadcast %19 : vector<8x1xf32> to vector<8x8xf32>
    %21 = arith.divf %17, %20 : vector<8x8xf32>
    %cst_9 = arith.constant dense<0.000000e+00> : vector<8x8xf32>
    %22 = tpu.matmul %21, %11, %cst_9 {dimension_numbers = #tpu.dot_dimension_numbers<[1], [0], [0], [1], [0, 0, 1, 1], [], []>} : vector<8x8xf32>, vector<8x8xf32>, vector<8x8xf32> -> vector<8x8xf32>
    %cst_10 = arith.constant 0.000000e+00 : f32
    %23 = vector.broadcast %cst_10 : f32 to vector<8x8xf32>
    %24 = arith.maximumf %22, %23 : vector<8x8xf32>
    %c0_11 = arith.constant 0 : index
    %c0_12 = arith.constant 0 : index
    %c0_13 = arith.constant 0 : index
    %25 = vector.load %arg4[%c0_11, %c0_12, %c0_13] : memref<1x8x32xf32, #tpu.memory_space<vmem>>, vector<1x8x8xf32>
    %26 = vector.shape_cast %25 : vector<1x8x8xf32> to vector<8x8xf32>
    %27 = vector.shape_cast %24 : vector<8x8xf32> to vector<1x8x8xf32>
    tpu.vector_store %arg4[%c0_11, %c0_12, %c0_13], %27 {strides = array<i32>} : memref<1x8x32xf32, #tpu.memory_space<vmem>>, vector<1x8x8xf32>,
    %28 = vector.extract_strided_slice %8 {offsets = [0, 8], sizes = [8, 8], strides = [1, 1]} : vector<8x96xf32> to vector<8x8xf32>
    %29 = vector.extract_strided_slice %8 {offsets = [0, 40], sizes = [8, 8], strides = [1, 1]} : vector<8x96xf32> to vector<8x8xf32>
    %30 = vector.extract_strided_slice %8 {offsets = [0, 72], sizes = [8, 8], strides = [1, 1]} : vector<8x96xf32> to vector<8x8xf32>
    %cst_14 = arith.constant dense<0.000000e+00> : vector<8x8xf32>
    %31 = tpu.matmul %28, %29, %cst_14 {dimension_numbers = #tpu.dot_dimension_numbers<[1], [1], [0], [0], [0, 0, 1, 0], [], []>} : vector<8x8xf32>, vector<8x8xf32>, vector<8x8xf32> -> vector<8x8xf32>
    %cst_15 = arith.constant dense<0xFF800000> : vector<8xf32>
    %32 = vector.multi_reduction <maximumf>, %31, %cst_15 [1] : vector<8x8xf32> to vector<8xf32>
    %33 = vector.shape_cast %32 : vector<8xf32> to vector<8x1xf32>
    %34 = vector.broadcast %33 : vector<8x1xf32> to vector<8x8xf32>
    %35 = arith.subf %31, %34 : vector<8x8xf32>
    %36 = math.exp %35 : vector<8x8xf32>
    %cst_16 = arith.constant dense<0.000000e+00> : vector<8xf32>
    %37 = vector.multi_reduction <add>, %36, %cst_16 [1] : vector<8x8xf32> to vector<8xf32>
    %38 = vector.shape_cast %37 : vector<8xf32> to vector<8x1xf32>
    %39 = vector.broadcast %38 : vector<8x1xf32> to vector<8x8xf32>
    %40 = arith.divf %36, %39 : vector<8x8xf32>
    %cst_17 = arith.constant dense<0.000000e+00> : vector<8x8xf32>
    %41 = tpu.matmul %40, %30, %cst_17 {dimension_numbers = #tpu.dot_dimension_numbers<[1], [0], [0], [1], [0, 0, 1, 1], [], []>} : vector<8x8xf32>, vector<8x8xf32>, vector<8x8xf32> -> vector<8x8xf32>
    %cst_18 = arith.constant 0.000000e+00 : f32
    %42 = vector.broadcast %cst_18 : f32 to vector<8x8xf32>
    %43 = arith.maximumf %41, %42 : vector<8x8xf32>
    %c0_19 = arith.constant 0 : index
    %c0_20 = arith.constant 0 : index
    %c8 = arith.constant 8 : index
    %44 = vector.load %arg4[%c0_19, %c0_20, %c8] : memref<1x8x32xf32, #tpu.memory_space<vmem>>, vector<1x8x8xf32>
    %45 = vector.shape_cast %44 : vector<1x8x8xf32> to vector<8x8xf32>
    %46 = vector.shape_cast %43 : vector<8x8xf32> to vector<1x8x8xf32>
    tpu.vector_store %arg4[%c0_19, %c0_20, %c8], %46 {strides = array<i32>} : memref<1x8x32xf32, #tpu.memory_space<vmem>>, vector<1x8x8xf32>,
    %47 = vector.extract_strided_slice %8 {offsets = [0, 16], sizes = [8, 8], strides = [1, 1]} : vector<8x96xf32> to vector<8x8xf32>
    %48 = vector.extract_strided_slice %8 {offsets = [0, 48], sizes = [8, 8], strides = [1, 1]} : vector<8x96xf32> to vector<8x8xf32>
    %49 = vector.extract_strided_slice %8 {offsets = [0, 80], sizes = [8, 8], strides = [1, 1]} : vector<8x96xf32> to vector<8x8xf32>
    %cst_21 = arith.constant dense<0.000000e+00> : vector<8x8xf32>
    %50 = tpu.matmul %47, %48, %cst_21 {dimension_numbers = #tpu.dot_dimension_numbers<[1], [1], [0], [0], [0, 0, 1, 0], [], []>} : vector<8x8xf32>, vector<8x8xf32>, vector<8x8xf32> -> vector<8x8xf32>
    %cst_22 = arith.constant dense<0xFF800000> : vector<8xf32>
    %51 = vector.multi_reduction <maximumf>, %50, %cst_22 [1] : vector<8x8xf32> to vector<8xf32>
    %52 = vector.shape_cast %51 : vector<8xf32> to vector<8x1xf32>
    %53 = vector.broadcast %52 : vector<8x1xf32> to vector<8x8xf32>
    %54 = arith.subf %50, %53 : vector<8x8xf32>
    %55 = math.exp %54 : vector<8x8xf32>
    %cst_23 = arith.constant dense<0.000000e+00> : vector<8xf32>
    %56 = vector.multi_reduction <add>, %55, %cst_23 [1] : vector<8x8xf32> to vector<8xf32>
    %57 = vector.shape_cast %56 : vector<8xf32> to vector<8x1xf32>
    %58 = vector.broadcast %57 : vector<8x1xf32> to vector<8x8xf32>
    %59 = arith.divf %55, %58 : vector<8x8xf32>
    %cst_24 = arith.constant dense<0.000000e+00> : vector<8x8xf32>
    %60 = tpu.matmul %59, %49, %cst_24 {dimension_numbers = #tpu.dot_dimension_numbers<[1], [0], [0], [1], [0, 0, 1, 1], [], []>} : vector<8x8xf32>, vector<8x8xf32>, vector<8x8xf32> -> vector<8x8xf32>
    %cst_25 = arith.constant 0.000000e+00 : f32
    %61 = vector.broadcast %cst_25 : f32 to vector<8x8xf32>
    %62 = arith.maximumf %60, %61 : vector<8x8xf32>
    %c0_26 = arith.constant 0 : index
    %c0_27 = arith.constant 0 : index
    %c16 = arith.constant 16 : index
    %63 = vector.load %arg4[%c0_26, %c0_27, %c16] : memref<1x8x32xf32, #tpu.memory_space<vmem>>, vector<1x8x8xf32>
    %64 = vector.shape_cast %63 : vector<1x8x8xf32> to vector<8x8xf32>
    %65 = vector.shape_cast %62 : vector<8x8xf32> to vector<1x8x8xf32>
    tpu.vector_store %arg4[%c0_26, %c0_27, %c16], %65 {strides = array<i32>} : memref<1x8x32xf32, #tpu.memory_space<vmem>>, vector<1x8x8xf32>,
    %66 = vector.extract_strided_slice %8 {offsets = [0, 24], sizes = [8, 8], strides = [1, 1]} : vector<8x96xf32> to vector<8x8xf32>
    %67 = vector.extract_strided_slice %8 {offsets = [0, 56], sizes = [8, 8], strides = [1, 1]} : vector<8x96xf32> to vector<8x8xf32>
    %68 = vector.extract_strided_slice %8 {offsets = [0, 88], sizes = [8, 8], strides = [1, 1]} : vector<8x96xf32> to vector<8x8xf32>
    %cst_28 = arith.constant dense<0.000000e+00> : vector<8x8xf32>
    %69 = tpu.matmul %66, %67, %cst_28 {dimension_numbers = #tpu.dot_dimension_numbers<[1], [1], [0], [0], [0, 0, 1, 0], [], []>} : vector<8x8xf32>, vector<8x8xf32>, vector<8x8xf32> -> vector<8x8xf32>
    %cst_29 = arith.constant dense<0xFF800000> : vector<8xf32>
    %70 = vector.multi_reduction <maximumf>, %69, %cst_29 [1] : vector<8x8xf32> to vector<8xf32>
    %71 = vector.shape_cast %70 : vector<8xf32> to vector<8x1xf32>
    %72 = vector.broadcast %71 : vector<8x1xf32> to vector<8x8xf32>
    %73 = arith.subf %69, %72 : vector<8x8xf32>
    %74 = math.exp %73 : vector<8x8xf32>
    %cst_30 = arith.constant dense<0.000000e+00> : vector<8xf32>
    %75 = vector.multi_reduction <add>, %74, %cst_30 [1] : vector<8x8xf32> to vector<8xf32>
    %76 = vector.shape_cast %75 : vector<8xf32> to vector<8x1xf32>
    %77 = vector.broadcast %76 : vector<8x1xf32> to vector<8x8xf32>
    %78 = arith.divf %74, %77 : vector<8x8xf32>
    %cst_31 = arith.constant dense<0.000000e+00> : vector<8x8xf32>
    %79 = tpu.matmul %78, %68, %cst_31 {dimension_numbers = #tpu.dot_dimension_numbers<[1], [0], [0], [1], [0, 0, 1, 1], [], []>} : vector<8x8xf32>, vector<8x8xf32>, vector<8x8xf32> -> vector<8x8xf32>
    %cst_32 = arith.constant 0.000000e+00 : f32
    %80 = vector.broadcast %cst_32 : f32 to vector<8x8xf32>
    %81 = arith.maximumf %79, %80 : vector<8x8xf32>
    %c0_33 = arith.constant 0 : index
    %c0_34 = arith.constant 0 : index
    %c24 = arith.constant 24 : index
    %82 = vector.load %arg4[%c0_33, %c0_34, %c24] : memref<1x8x32xf32, #tpu.memory_space<vmem>>, vector<1x8x8xf32>
    %83 = vector.shape_cast %82 : vector<1x8x8xf32> to vector<8x8xf32>
    %84 = vector.shape_cast %81 : vector<8x8xf32> to vector<1x8x8xf32>
    tpu.vector_store %arg4[%c0_33, %c0_34, %c24], %84 {strides = array<i32>} : memref<1x8x32xf32, #tpu.memory_space<vmem>>, vector<1x8x8xf32>,
    return
  }
  func.func @transform_0(%arg0: i32) -> (i32, i32, i32) {
    %c0_i32 = arith.constant 0 : i32
    %c0_i32_0 = arith.constant 0 : i32
    %c0_i32_1 = arith.constant 0 : i32
    return %arg0, %c0_i32, %c0_i32_0 : i32, i32, i32
  }
  func.func @transform_1(%arg0: i32) -> (i32, i32) {
    %c0_i32 = arith.constant 0 : i32
    %c0_i32_0 = arith.constant 0 : i32
    %c0_i32_1 = arith.constant 0 : i32
    return %c0_i32, %c0_i32_0 : i32, i32
  }
  func.func @transform_2(%arg0: i32) -> (i32, i32) {
    %c0_i32 = arith.constant 0 : i32
    %c0_i32_0 = arith.constant 0 : i32
    %c0_i32_1 = arith.constant 0 : i32
    return %c0_i32, %c0_i32_0 : i32, i32
  }
  func.func @transform_3(%arg0: i32) -> (i32, i32, i32) {
    %c0_i32 = arith.constant 0 : i32
    %c0_i32_0 = arith.constant 0 : i32
    %c0_i32_1 = arith.constant 0 : i32
    return %arg0, %c0_i32, %c0_i32_0 : i32, i32, i32
  }
}

</mosaic_0001>

<bundles_post_ra>
// kernel: tpu_custom_call.1
= control target key start
LH: loop header
LB: loop body
LE: loop exit
PB: predicated region body
PF: predicated region fallthrough
CT: control target
= control target key end

     0   :  { %8 = vsyncpa [#allocation3], 0  ;;  %s1698_s0 = inlined_call_operand.hbm [shape: f32[2,8,32], index: 0, kind: input, shape index: {}]   ;;  %s1699_s1 = inlined_call_operand.hbm [shape: f32[32,96], index: 1, kind: input, shape index: {}]   ;;  %s1700_s2 = inlined_call_operand.vmem [shape: f32[1,96], index: 2, kind: input, shape index: {}]   ;;  %s1701_s3 = inlined_call_operand.hbm [shape: f32[2,8,32], index: 3, kind: output, shape index: {}]  }
   0x1   :  { %10 = vsyncpa [#allocation3 + $0x1], 0 }
   0x2   :  { %11 = vsyncpa [#allocation6], 0 }
   0x3   :  { %12 = vsyncpa [#allocation4], 0 }
   0x4   :  { %14 = vsyncpa [#allocation4 + $0x1], 0  ;;  %s1434_s12 = smov 0   ;;  %s1436_s13 = smov 0  }
   0x5   :  { %s1438_s14 = smov 0   ;;  %s1440_s15 = smov 0  }
   0x6 LB: > { %s1455_s16 = sadd.s32 4294967295, %s1390_s15   ;;  %s1064_s17 = sadd.s32 4294967294, %s1390_s15   ;;  %s1390_s15 = sphi %s1440_s15, %s1721_s15   ;;  %s1386_s14 = sphi %s1438_s14, %s1720_s14   ;;  %s1382_s13 = sphi %s1436_s13, %s1719_s13   ;;  %s1378_s12 = sphi %s1434_s12, %s1718_s12  }
   0x7   : > { %p40_p0 = scmp.ne.s32.totalorder %s1382_s13, %s1378_s12  ;;  %p1702_p1 = scmp.eq.s32.totalorder %s1455_s16, 0 }
   0x8   : > { %p112_p3 = scmp.eq.s32.totalorder %s1064_s17, 1  ;;  %p1065_p5 = scmp.ge.s32.totalorder %s1390_s15, 1 }
   0x9   : > { %p1464_p4 = por %p1702_p1, %p40_p0  ;;  %p119_p7 = scmp.lt.s32.totalorder %s1390_s15, 3 }
   0xa   : > { %p1469_p6 = por %p112_p3, %p40_p0  ;;  %s1392_s21 = smov [#allocation5]  }
   0xb   : > { %s1705_s18 = scalar_select %p1464_p4, 1, 0 }
   0xc   : > { %s1706_s19 = scalar_select %p1469_p6, 1, 0 }
   0xd   : > { %p1474_p8 = pnand %p1065_p5, %p119_p7  ;;  %s131_s22 = sshll.u32 %s1392_s21, 4  ;;  %s1478_s22 = int_to_ptr.vmem [resolvable:$true] %s131_s22 }
   0xe   : > { %s1490_s24 = sadd.s32 1, %s1390_s15   ;;  %s27_s25 = sadd.s32 1, %s1386_s14 }
   0xf   : > { %s1707_s20 = scalar_select %p1474_p8, 1, 0 }
  0x10   : > { %p1178_p9 = pneg %p1474_p8  ;;  %s24_s26 = ssub.s32 %s1390_s15, %s1490_s24 }
  0x11   : > { %s1262_s29 = scalar_lea.hbm %s1699_s1, 512 }
  0x12   : > { %p1485_p11 = pnand %p1178_p9, %p1702_p1  ;;  %p1263_p12 = scmp.ne.s32.totalorder %s1699_s1, %s1262_s29 }
  0x13   : > { %p1269_p5 = scmp.lt.u32.totalorder %s1262_s29, %s1699_s1 }
  0x14   : > { %p1264_p13 = pneg %p1485_p11 }
  0x16   : > { %p1265_p0 = pnand %p1264_p13, %p1263_p12 }
  0x18   : > { %p1266_p3 = pneg %p1265_p0 }
  0x1a   : > { %p1271_p7 = pnand %p1269_p5, %p1266_p3 }
  0x1c   : > { %1274 = shalt.err (!%p1271_p7)
}
  0x1d   : > { %s1275_s7 = scalar_lea.vmem %s1478_s22, 512  ;;  %p1283_p2 = scmp.lt.s32.totalorder %s1478_s22, %s1478_s22 }
  0x1e   : > { %p1276_p9 = scmp.ne.s32.totalorder %s1478_s22, %s1275_s7  ;;  %p1284_p6 = scmp.lt.s32.totalorder %s1275_s7, %s1275_s7 }
  0x20   : > { %p1278_p10 = pnand %p1276_p9, %p1264_p13  ;;  %p1285_p4 = por %p1284_p6, %p1283_p2 }
  0x22   : > { %p1279_p1 = pneg %p1278_p10 }
  0x24   : > { %p1286_p8 = pnand %p1285_p4, %p1279_p1 }
  0x26   : > { %1289 = shalt.err (!%p1286_p8)
}
  0x27   : > { %s1393_s8 = smov 128   ;;  %s1394_s9 = smov 8  }
  0x28   : > { %1181 = dma.hbm_to_vmem [thread:$0]  (!%p1485_p11), %s1699_s1, 512, %s1478_s22, [#allocation6], %s1393_s8, %s1393_s8, %s1394_s9  }
  0x29   : > { %p25_p2 = scmp.eq.s32.totalorder %s24_s26, 0  ;;  %p34_p1 = scmp.ne.s32.totalorder %s1386_s14, %s1382_s13 }
  0x2a   : > { %p35_p4 = scmp.eq.s32.totalorder %s1390_s15, 0  ;;  %p1191_p6 = scmp.lt.s32.totalorder %s1390_s15, 2 }
  0x2b   : > { %s1521_s17 = scalar_select %p25_p2, %s1386_s14, %s27_s25  }
  0x2c   : > { %p36_p8 = por %p35_p4, %p34_p1  ;;  %p1709_p10 = scmp.eq.s32.totalorder %s1455_s16, 1 }
  0x2d   : > { %s148_s27 = sand.u32 1, %s1386_s14   ;;  %s1069_s28 = sshll.u32 %s1390_s15, 7 }
  0x2e   : > { %p1525_p12 = por %p1709_p10, %p34_p1  ;;  %s1068_s29 = sshll.u32 %s148_s27, 3 }
  0x2f   : > { %s1534_s4 = scalar_lea.hbm %s1698_s0, %s1069_s28  ;;  %s152_s22 = scalar_lea.vmem [#allocation2], %s1068_s29 }
  0x30   : > { %s159_s25 = sshll.u32 %s152_s22, 4  ;;  %p1536_p11 = pnand %p1191_p6, %p36_p8  ;;  %s1540_s25 = int_to_ptr.vmem [resolvable:$true] %s159_s25 }
  0x31   : > { %s149_s5 = scalar_lea.sflag [#allocation3], %s148_s27  ;;  %s1290_s6 = scalar_lea.hbm %s1534_s4, 128 }
  0x32   : > { %p1291_p13 = scmp.ne.s32.totalorder %s1534_s4, %s1290_s6  ;;  %p1292_p0 = pneg %p1536_p11 }
  0x33   : > { %s1295_s9 = scalar_lea.hbm %s1698_s0, 256  ;;  %p1296_p7 = scmp.lt.u32.totalorder %s1534_s4, %s1698_s0 }
  0x34   : > { %p1293_p3 = pnand %p1292_p0, %p1291_p13  ;;  %p1297_p9 = scmp.lt.u32.totalorder %s1295_s9, %s1290_s6 }
  0x35   : > { %p1299_p1 = scmp.lt.u32.totalorder %s1290_s6, %s1534_s4 }
  0x36   : > { %p1294_p5 = pneg %p1293_p3  ;;  %p1298_p2 = por %p1297_p9, %p1296_p7 }
  0x38   : > { %p1300_p4 = por %p1299_p1, %p1298_p2 }
  0x3a   : > { %p1301_p6 = pnand %p1300_p4, %p1294_p5 }
  0x3c   : > { %1304 = shalt.err (!%p1301_p6)
}
  0x3d   : > { %s1305_s27 = scalar_lea.vmem %s1540_s25, 128  ;;  %s1395_s28 = smov [#allocation2]  }
  0x3e   : > { %p1306_p8 = scmp.ne.s32.totalorder %s1540_s25, %s1305_s27  ;;  %s1310_s29 = sshll.u32 %s1395_s28, 4  ;;  %s1311_s29 = int_to_ptr.vmem [resolvable:$false] %s1310_s29 }
  0x3f   : > { %s1312_s23 = scalar_lea.vmem %s1311_s29, 256  ;;  %p1313_p3 = scmp.lt.s32.totalorder %s1540_s25, %s1311_s29 }
  0x40   : > { %p1308_p10 = pnand %p1306_p8, %p1292_p0  ;;  %p1314_p7 = scmp.lt.s32.totalorder %s1312_s23, %s1305_s27 }
  0x42   : > { %p1309_p13 = pneg %p1308_p10  ;;  %p1315_p9 = por %p1314_p7, %p1313_p3 }
  0x44   : > { %p1316_p2 = pnand %p1315_p9, %p1309_p13 }
  0x46   : > { %1319 = shalt.err (!%p1316_p2)
}
  0x47   : > { %1185 = dma.hbm_to_vmem [thread:$0]  (!%p1536_p11), %s1534_s4, 128, %s1540_s25, %s149_s5  }
  0x48   : > { %p1712_p5 = scmp.ne.s32.totalorder %s1707_s20, 0 }
  0x49   : > { %s1570_s30 = sand.u32 (!%p1712_p5), 1, %s1382_s13   ;;  %p1713_p0 = scmp.ne.s32.totalorder (!%p1712_p5), %s1705_s18, 0 }
  0x4a   : > { %168 = sbr.rel (%p1712_p5) target bundleno = 1353 (0x549), region = 32  ;;  %s1071_s22 = sshll.u32 (!%p1712_p5), %s1570_s30, 3 }
  0x4b   : > { %s171_s6 = scalar_lea.sflag (!%p1712_p5), [#allocation3], %s1570_s30  ;;  %s174_s7 = scalar_lea.vmem (!%p1712_p5), [#allocation2], %s1071_s22 }
  0x51   : > { %1365 = dma.done.wait (%p1713_p0), %s171_s6, 128  }
  0x52   : > { %1367 = vsyncadd (%p1713_p0), %s171_s6, 4294967168  ;;  %p1714_p11 = scmp.eq.s32.totalorder %s1455_s16, 0 }
  0x54   : > { %1369 = dma.done.wait (%p1714_p11), [#allocation6], 512   ;;  %p1715_p1 = pmov %p1714_p11 }
  0x55   : > { %v1396_v0 = vmov 0.0|0.0   ;;  %vm1397_vm0 = vmmov 0   ;;  %v1398_v1 = vmov 0.0   ;;  %v202_v2 = vld [vmem:[#allocation5] sm:$0xff]  ;;  %v203_v3 = vld [vmem:[#allocation5 + $0x8] sm:$0xff]  ;;  %v204_v4 = vld [vmem:[#allocation5 + $0x10] sm:$0xff] }
  0x56   : > { %1371 = vsyncadd (%p1715_p1), [#allocation6], 4294966784  ;;  %1164 = vmatprep.subr.bf16.mxu0 %v1396_v0  ;;  %1121 = vmatprep.mubr.msk.f32.mxu0 %vm1397_vm0, %v1398_v1  ;;  %v1165_v5 = vpack.c.bf16 %v203_v3, %v202_v2  ;;  %v205_v6 = vld [vmem:[#allocation5 + $0x18] sm:$0xff]  ;;  %vm213_vm1 = vcmask 261120   ;;  %v1074_v9 = vld [vmem:[%s1700_s2] ss:$0 sm:$0xff] }
  0x57   : > { %1124 = vmatprep.subr.mxu1 %v1398_v1  ;;  %1126 = vmatprep.mubr.msk.f32.mxu1 %vm1397_vm0, %v1398_v1  ;;  %v1168_v7 = vpack.c.bf16 %v205_v6, %v204_v4  ;;  %v201_v8 = vld [vmem:[%s174_s7] sm:$0xff]  ;;  %s1399_s4 = smov 120   ;;  %s1400_s25 = smov 96   ;;  %vm290_vm2 = vcmask 64512   ;;  %vm624_vm3 = vcmask 130112   ;;  %vm796_vm4 = vcmask 195712  }
  0x58   : > { %1166 = vmatpush3.bf16.msra.mxu0 %v1165_v5  ;;  %s1401_s26 = smov 80   ;;  %s1402_s5 = smov 88   ;;  %vm968_vm5 = vcmask 261312  }
  0x59   : > { %1167 = vmatprep.subr.bf16.mxu0 %v1396_v0  ;;  %s1403_s8 = smov 72   ;;  %s1404_s9 = smov 112  }
  0x5a   : > { %s1405_s10 = smov 104   ;;  %s1406_s11 = smov 56  }
  0x5b   : > { %s1407_s27 = smov 64   ;;  %s1408_s28 = smov 48  }
  0x5c   : > { %1169 = vmatpush3.bf16.msra.mxu0 %v1168_v7  ;;  %s1409_s29 = smov 40   ;;  %s200_s23 = scalar_lea.vmem [#allocation7], %s1071_s22 }
  0x5d   : > { %1134 = vmatprep.subr.mxu0 %v1398_v1  ;;  %s1410_s6 = smov 8   ;;  %s1411_s7 = smov 16  }
  0x5e   : > { %s1412_s18 = smov 24   ;;  %s1089_s22 = sshll.u32 %s1455_s16, 7 }
  0x5f   : > { %1122 = vmatmul.mubr.msk.f32.vlgmr.msra.gmra.mrb[0].mxu0 %vm213_vm1, %v201_v8  ;;  %s984_s20 = sshll.u32 %s200_s23, 4  ;;  %s1413_s16 = smov [#allocation7]   ;;  %s1656_s20 = int_to_ptr.vmem [resolvable:$true] %s984_s20 }
  0x60   : > { %1136 = vmatprep.mubr.msk.f32.mxu0 %vm1397_vm0, %v1398_v1 }
 0x132   : > { %v283_v10 = vpop.f32.mrb[0].mxu0 }
 0x133   : > { %v1595_v11 = vadd.f32 %v1074_v9, %v283_v10  ;;  %v1123_v12 = vpop.f32.mrb[1].mxu0 }
 0x135   : > { %454 = vrot.lane.b32.xlu1 %v1595_v11, %s1399_s4  ;;  %288 = vrot.lane.b32.xlu0 %v1595_v11, %s1400_s25 }
 0x139   : > { %628 = vrot.lane.b32.xlu1 %v1595_v11, %s1401_s26  ;;  %456 = vrot.lane.b32.xlu0 %v1595_v11, %s1402_s5  ;;  %s1654_s26 = scalar_lea.hbm %s1701_s3, %s1089_s22  ;;  %s971_s5 = scalar_lea.sflag [#allocation4], %s1570_s30 }
 0x13d   : > { %800 = vrot.lane.b32.xlu1 %v1595_v11, %s1403_s8  ;;  %626 = vrot.lane.b32.xlu0 %v1595_v11, %s1404_s9  ;;  %s1320_s8 = scalar_lea.vmem %s1656_s20, 128  ;;  %s1324_s9 = sshll.u32 %s1413_s16, 4  ;;  %s1325_s9 = int_to_ptr.vmem [resolvable:$false] %s1324_s9 }
 0x13e   : > { %p1321_p4 = scmp.ne.s32.totalorder %s1656_s20, %s1320_s8  ;;  %p1327_p10 = scmp.lt.s32.totalorder %s1656_s20, %s1325_s9 }
 0x140   : > { %p1322_p6 = pnand %p1321_p4, %p1525_p12 }
 0x141   : > { %798 = vrot.lane.b32.xlu0 %v1595_v11, %s1405_s10  ;;  %s1326_s10 = scalar_lea.vmem %s1325_s9, 256 }
 0x142   : > { %p1323_p8 = pneg %p1322_p6  ;;  %p1328_p13 = scmp.lt.s32.totalorder %s1326_s10, %s1320_s8 }
 0x144   : > { %p1329_p3 = por %p1328_p13, %p1327_p10 }
 0x146   : > { %p1330_p7 = pnand %p1329_p3, %p1323_p8 }
 0x1a7   : > { %v455_v13 = vpop.permute.xlu1 %454  ;;  %v289_v14 = vpop.permute.xlu0 %288 }
 0x1a8   : > { %1125 = vmatpush3.xpose.msk.msra.mxu1 %vm290_vm2, %v289_v14 }
 0x1a9   : > { %1129 = vmatprep.subr.mxu1 %v1398_v1 }
 0x1ab   : > { %1127 = vmatmul.mubr.msk.f32.vlgmr.msra.gmra.mrb[0].mxu1 %vm290_vm2, %v1595_v11  ;;  %v457_v15 = vpop.permute.xlu0 %456  ;;  %v629_v16 = vpop.permute.xlu1 %628 }
 0x1ac   : > { %1135 = vmatpush3.xpose.msk.msra.mxu0 %vm290_vm2, %v457_v15  ;;  %1131 = vmatprep.mubr.msk.f32.mxu1 %vm1397_vm0, %v1398_v1 }
 0x1ad   : > { %1144 = vmatprep.subr.mxu0 %v1398_v1 }
 0x1af   : > { %1137 = vmatmul.mubr.msk.f32.vlgmr.msra.gmra.mrb[2].mxu0 %vm290_vm2, %v455_v13  ;;  %v627_v17 = vpop.permute.xlu0 %626  ;;  %v801_v18 = vpop.permute.xlu1 %800 }
 0x1b0   : > { %1145 = vmatpush3.xpose.msk.msra.mxu0 %vm290_vm2, %v629_v16  ;;  %1146 = vmatprep.mubr.msk.f32.mxu0 %vm1397_vm0, %v1398_v1 }
 0x1b1   : > { %1154 = vmatprep.subr.mxu0 %v1398_v1 }
 0x1b3   : > { %1147 = vmatmul.mubr.msk.f32.vlgmr.msra.gmra.mrb[4].mxu0 %vm290_vm2, %v627_v17  ;;  %v799_v19 = vpop.permute.xlu0 %798 }
 0x1b4   : > { %1155 = vmatpush3.xpose.msk.msra.mxu0 %vm290_vm2, %v801_v18  ;;  %1156 = vmatprep.mubr.msk.f32.mxu0 %vm1397_vm0, %v1398_v1 }
 0x1b7   : > { %1157 = vmatmul.mubr.msk.f32.vlgmr.msra.gmra.mrb[6].mxu0 %vm290_vm2, %v799_v19 }
 0x27e   : > { %v361_v20 = vpop.f32.mrb[0].mxu1 }
 0x27f   : > { %v1128_v21 = vpop.f32.mrb[1].mxu1  ;;  %v365_v22 = vsel %vm290_vm2, %v361_v20, -inf }
 0x280   : > { %366 = vmax.xlane.f32.xlu1 %v365_v22 }
 0x282   : > { %v528_v23 = vpop.f32.mrb[2].mxu0 }
 0x283   : > { %v1138_v24 = vpop.f32.mrb[3].mxu0  ;;  %v532_v25 = vsel %vm290_vm2, %v528_v23, -inf }
 0x284   : > { %533 = vmax.xlane.f32.xlu0 %v532_v25 }
 0x286   : > { %v700_v26 = vpop.f32.mrb[4].mxu0 }
 0x287   : > { %v1148_v27 = vpop.f32.mrb[5].mxu0  ;;  %v704_v28 = vsel %vm290_vm2, %v700_v26, -inf }
 0x288   : > { %705 = vmax.xlane.f32.xlu0 %v704_v28 }
 0x28a   : > { %v872_v29 = vpop.f32.mrb[6].mxu0 }
 0x28b   : > { %v1158_v30 = vpop.f32.mrb[7].mxu0  ;;  %v876_v31 = vsel %vm290_vm2, %v872_v29, -inf }
 0x28c   : > { %877 = vmax.xlane.f32.xlu1 %v876_v31 }
 0x29d   : > { %543 = vrot.lane.b32.xlu1 %v1595_v11, %s1406_s11 }
 0x30d   : > { %v367_v32 = vpop.xlane.xlu1 %366 }
 0x30e   : > { %v368_v33 = vsub.f32 %v361_v20, %v367_v32 }
 0x310   : > { %v369_v34 = vmul.f32 1.442695, %v368_v33 }
 0x311   : > { %v534_v35 = vpop.xlane.xlu0 %533 }
 0x312   : > { %1246 = vpow2.f32 %v369_v34  ;;  %v535_v36 = vsub.f32 %v528_v23, %v534_v35 }
 0x314   : > { %v536_v37 = vmul.f32 1.442695, %v535_v36 }
 0x315   : > { %v706_v47 = vpop.xlane.xlu0 %705 }
 0x316   : > { %1248 = vpow2.f32 %v536_v37  ;;  %v707_v48 = vsub.f32 %v700_v26, %v706_v47 }
 0x318   : > { %v708_v49 = vmul.f32 1.442695, %v707_v48 }
 0x319   : > { %v878_v38 = vpop.xlane.xlu1 %877 }
 0x31a   : > { %v879_v39 = vsub.f32 %v872_v29, %v878_v38 }
 0x31c   : > { %v1247_v40 = vpop.eup %1246  ;;  %v880_v41 = vmul.f32 1.442695, %v879_v39 }
 0x31d   : > { %v371_v42 = vsel %vm290_vm2, %v1247_v40, 0.0  ;;  %v544_v52 = vpop.permute.xlu1 %543 }
 0x31e   : > { %1250 = vpow2.f32 %v880_v41  ;;  %372 = vadd.xlane.f32.xlu0 %v371_v42 }
 0x31f   : > { %1252 = vpow2.f32 %v708_v49 }
 0x320   : > { %v1249_v43 = vpop.eup %1248 }
 0x321   : > { %v538_v44 = vsel %vm290_vm2, %v1249_v43, 0.0 }
 0x322   : > { %539 = vadd.xlane.f32.xlu1 %v538_v44 }
 0x328   : > { %v1251_v45 = vpop.eup %1250 }
 0x329   : > { %v882_v46 = vsel %vm290_vm2, %v1251_v45, 0.0  ;;  %v1253_v50 = vpop.eup %1252 }
 0x32a   : > { %883 = vadd.xlane.f32.xlu1 %v882_v46  ;;  %v710_v51 = vsel %vm290_vm2, %v1253_v50, 0.0 }
 0x334   : > { %376 = vrot.lane.b32.xlu0 %v1595_v11, %s1407_s27 }
 0x33b   : > { %715 = vrot.lane.b32.xlu1 %v1595_v11, %s1408_s28 }
 0x353   : > { %711 = vadd.xlane.f32.xlu0 %v710_v51 }
 0x369   : > { %887 = vrot.lane.b32.xlu0 %v1595_v11, %s1409_s29 }
 0x3ab   : > { %v373_v53 = vpop.xlane.xlu0 %372 }
 0x3ac   : > { %1254 = vrcp.f32 %v373_v53 }
 0x3af   : > { %v377_v54 = vpop.permute.xlu0 %376  ;;  %v540_v55 = vpop.xlane.xlu1 %539 }
 0x3b0   : > { %1256 = vrcp.f32 %v540_v55  ;;  %1130 = vmatpush3.msra.mxu1 %v377_v54 }
 0x3b1   : > { %1139 = vmatprep.subr.mxu1 %v1398_v1 }
 0x3b6   : > { %v1255_v56 = vpop.eup %1254 }
 0x3b7   : > { %v375_v57 = vmul.f32 %v1255_v56, %v1247_v40  ;;  %v884_v58 = vpop.xlane.xlu1 %883 }
 0x3b9   : > { %1132 = vmatmul.mubr.msk.f32.vlgmr.msra.gmra.mrb[2].mxu1 %vm290_vm2, %v375_v57 }
 0x3ba   : > { %v1257_v59 = vpop.eup %1256  ;;  %1140 = vmatpush3.msra.mxu1 %v544_v52  ;;  %1141 = vmatprep.mubr.msk.f32.mxu1 %vm1397_vm0, %v1398_v1 }
 0x3bb   : > { %v542_v60 = vmul.f32 %v1257_v59, %v1249_v43  ;;  %v716_v61 = vpop.permute.xlu1 %715  ;;  %1149 = vmatprep.subr.mxu1 %v1398_v1 }
 0x3bd   : > { %1142 = vmatmul.mubr.msk.f32.vlgmr.msra.gmra.mrb[4].mxu1 %vm290_vm2, %v542_v60 }
 0x3be   : > { %1150 = vmatpush3.msra.mxu1 %v716_v61  ;;  %1151 = vmatprep.mubr.msk.f32.mxu1 %vm1397_vm0, %v1398_v1 }
 0x3bf   : > { %1159 = vmatprep.subr.mxu1 %v1398_v1 }
 0x3e0   : > { %v712_v62 = vpop.xlane.xlu0 %711 }
 0x3e1   : > { %1258 = vrcp.f32 %v712_v62 }
 0x3e2   : > { %1260 = vrcp.f32 %v884_v58 }
 0x3e4   : > { %v888_v3 = vpop.permute.xlu0 %887 }
 0x3eb   : > { %v1259_v63 = vpop.eup %1258 }
 0x3ec   : > { %v714_v0 = vmul.f32 %v1259_v63, %v1253_v50  ;;  %v1261_v2 = vpop.eup %1260 }
 0x3ed   : > { %v886_v4 = vmul.f32 %v1261_v2, %v1251_v45 }
 0x3ee   : > { %1152 = vmatmul.mubr.msk.f32.vlgmr.msra.gmra.mrb[6].mxu1 %vm290_vm2, %v714_v0 }
 0x3ef   : > { %1160 = vmatpush3.msra.mxu1 %v888_v3  ;;  %1161 = vmatprep.mubr.msk.f32.mxu1 %vm1397_vm0, %v1398_v1 }
 0x3f2   : > { %1162 = vmatmul.mubr.msk.f32.vlgmr.msra.gmra.mrb[8].mxu1 %vm290_vm2, %v886_v4 }
 0x48c   : > { %v448_v5 = vpop.f32.mrb[2].mxu1 }
 0x48d   : > { %v452_v6 = vmax.f32 %v448_v5, 0.0  ;;  %v1133_v7 = vpop.f32.mrb[3].mxu1 }
 0x48f   : > { %453 = vst.msk [vmem:[%s200_s23] sm:$0xff] %vm290_vm2, %v452_v6 }
 0x490   : > { %v615_v8 = vpop.f32.mrb[4].mxu1 }
 0x491   : > { %v619_v9 = vmax.f32 %v615_v8, 0.0  ;;  %v1143_v10 = vpop.f32.mrb[5].mxu1 }
 0x493   : > { %621 = vrot.lane.b32.xlu1 %v619_v9, %s1410_s6 }
 0x4c1   : > { %v787_v11 = vpop.f32.mrb[6].mxu1 }
 0x4c2   : > { %v791_v12 = vmax.f32 %v787_v11, 0.0  ;;  %v1153_v13 = vpop.f32.mrb[7].mxu1 }
 0x4c4   : > { %793 = vrot.lane.b32.xlu0 %v791_v12, %s1411_s7 }
 0x4c5   : > { %v959_v1 = vpop.f32.mrb[8].mxu1 }
 0x4c6   : > { %v963_v14 = vmax.f32 %v959_v1, 0.0  ;;  %v1163_v15 = vpop.f32.mrb[9].mxu1 }
 0x4c8   : > { %965 = vrot.lane.b32.xlu1 %v963_v14, %s1412_s18 }
 0x505   : > { %v622_v16 = vpop.permute.xlu1 %621 }
 0x506   : > { %625 = vst.msk [vmem:[%s200_s23] sm:$0xff] %vm624_vm3, %v622_v16 }
 0x536   : > { %v794_v17 = vpop.permute.xlu0 %793 }
 0x537   : > { %797 = vst.msk [vmem:[%s200_s23] sm:$0xff] %vm796_vm4, %v794_v17 }
 0x53a   : > { %v966_v18 = vpop.permute.xlu1 %965 }
 0x53b   : > { %969 = vst.msk [vmem:[%s200_s23] sm:$0xff] %vm968_vm5, %v966_v18 }
 0x53c   : > { %1333 = shalt.err (!%p1330_p7)
}
 0x53d   : > { %s1334_s30 = scalar_lea.hbm %s1654_s26, 128  ;;  %s1338_s28 = scalar_lea.hbm %s1701_s3, 256 }
 0x53e   : > { %p1335_p9 = scmp.ne.s32.totalorder %s1654_s26, %s1334_s30  ;;  %p1339_p0 = scmp.lt.u32.totalorder %s1654_s26, %s1701_s3 }
 0x53f   : > { %p1340_p11 = scmp.lt.u32.totalorder %s1338_s28, %s1334_s30  ;;  %p1342_p4 = scmp.lt.u32.totalorder %s1334_s30, %s1654_s26 }
 0x540   : > { %p1336_p2 = pnand %p1335_p9, %p1525_p12 }
 0x541   : > { %p1341_p1 = por %p1340_p11, %p1339_p0 }
 0x542   : > { %p1337_p5 = pneg %p1336_p2 }
 0x543   : > { %p1343_p6 = por %p1342_p4, %p1341_p1 }
 0x545   : > { %p1344_p8 = pnand %p1343_p6, %p1337_p5 }
 0x547   : > { %1347 = shalt.err (!%p1344_p8)
}
 0x548   : > { %1176 = dma.vmem_to_hbm [thread:$0]  (%p1525_p12), %s1656_s20, 128, %s1654_s26, %s971_s5  }
 0x549 PF: > { %s996_s6 = sand.u32 1, %s1378_s12   ;;  %p1716_p10 = scmp.ne.s32.totalorder %s1706_s19, 0 }
 0x54a   : > { %p1717_p13 = scmp.ge.s32.totalorder %s1390_s15, 2  ;;  %s997_s7 = scalar_lea.sflag [#allocation4], %s996_s6 }
 0x54c   : > { %p1187_p3 = pnand %p1717_p13, %p1716_p10 }
 0x54e   : > { %1373 = dma.done.wait (!%p1187_p3), %s997_s7, 128  }
 0x54f   : > { %1375 = vsyncadd (!%p1187_p3), %s997_s7, 4294967168  ;;  %p17_p7 = scmp.ge.s32.totalorder %s1490_s24, 4   ;;  %s1718_s12 = smov %s1382_s13 }
 0x550   : > { %s1719_s13 = smov %s1386_s14  ;;  %s1720_s14 = smov %s1521_s17 }
 0x551   : > { %s1721_s15 = smov %s1490_s24  ;;  %19 = sbr.rel (!%p17_p7) target bundleno = 6 (0x6), region = 81 }
 0x558   :  { %1002 = vsyncpa [#allocation3], 1 }
 0x559   :  { %1004 = vsyncpa [#allocation3 + $0x1], 1 }
 0x55a   :  { %1005 = vsyncpa [#allocation6], 1 }
 0x55b   :  { %1006 = vsyncpa [#allocation4], 1 }
 0x55c   :  { %1008 = vsyncpa [#allocation4 + $0x1], 1 }

</bundles_post_ra>
